<compile_context>
chip_gen: v6e
topology: v6e:2x2x1
jax: 0.10.0
libtpu: 0.0.40
codegen_flags: <defaults>
</compile_context>

<pallas_src>
import jax
import jax.numpy as jnp
from jax.experimental import pallas as pl
from jax.experimental.pallas import tpu as pltpu


def _round_up(x, m):
    return ((x + m - 1) // m) * m


def _gemm_bias_kernel(a_ref, b_ref, bias_ref, o_ref, acc_ref):
    """One (m-tile, k-tile) step of  O = A @ B + bias  with f32 accumulation."""
    k = pl.program_id(1)

    @pl.when(k == 0)
    def _():
        acc_ref[...] = jnp.broadcast_to(bias_ref[...].astype(jnp.float32),
                                        acc_ref.shape)

    acc_ref[...] += jnp.dot(a_ref[...], b_ref[...],
                            preferred_element_type=jnp.float32)

    @pl.when(k == pl.num_programs(1) - 1)
    def _():
        o_ref[...] = acc_ref[...].astype(o_ref.dtype)


def same_pad_conv3d(x, weight, bias=None, *, stride=(1, 1, 1),
                    padding_type="replicate", m_tile_rows=512,
                    compute_dtype=None):
    """Matches torch SamePadConv3D.forward.

    x:      (N, Cin, D, H, W)       (NCDHW, like PyTorch)
    weight: (Cout, Cin, kD, kH, kW)
    bias:   (Cout,) or None
    returns (N, Cout, Do, Ho, Wo)
    """
    N, Cin, D, H, W = x.shape
    Cout, Cin_w, kD, kH, kW = weight.shape
    assert Cin_w == Cin
    if isinstance(stride, int):
        stride = (stride,) * 3
    sD, sH, sW = stride

    # PyTorch: total padding = k - s per dim, split (p//2 + p%2, p//2).
    def _lr(k, s):
        p = k - s
        return (p // 2 + p % 2, p // 2)

    (pdl, pdr), (phl, phr), (pwl, pwr) = _lr(kD, sD), _lr(kH, sH), _lr(kW, sW)
    Do = (D + pdl + pdr - kD) // sD + 1
    Ho = (H + phl + phr - kH) // sH + 1
    Wo = (W + pwl + pwr - kW) // sW + 1
    if min(Do, Ho, Wo) < 1:
        raise ValueError("SamePadConv3D: output spatial dim < 1")

    # NCDHW -> NDHWC so the (tap, cin) fold is contiguous in the minor dim.
    x_cl = jnp.transpose(x, (0, 2, 3, 4, 1))          # (N, D, H, W, Cin)

    if padding_type != "replicate":
        # 'replicate' (the module default) is folded into the clamped gather
        # below; other modes materialize the pad first, after which the
        # gather indices never leave range, so the clamp is a no-op for them.
        mode = {"constant": "constant", "reflect": "reflect",
                "circular": "wrap"}[padding_type]
        cfg = tuple((max(l, 0), max(r, 0))
                    for (l, r) in ((pdl, pdr), (phl, phr), (pwl, pwr)))
        x_cl = jnp.pad(x_cl, ((0, 0),) + cfg + ((0, 0),), mode=mode)
        pdl, phl, pwl = min(pdl, 0), min(phl, 0), min(pwl, 0)
    D_, H_, W_ = x_cl.shape[1:4]

    # ---- im2col over (kD, kH, kW) with clamped (replicate) indices. --------
    d_in = jnp.clip(jnp.arange(Do)[:, None] * sD + jnp.arange(kD)[None, :] - pdl,
                    0, D_ - 1)                                   # (Do, kD)
    h_in = jnp.clip(jnp.arange(Ho)[:, None] * sH + jnp.arange(kH)[None, :] - phl,
                    0, H_ - 1)                                   # (Ho, kH)
    w_in = jnp.clip(jnp.arange(Wo)[:, None] * sW + jnp.arange(kW)[None, :] - pwl,
                    0, W_ - 1)                                   # (Wo, kW)
    # Flat voxel index, ordered (do, ho, wo, kd, kh, kw).
    vox = ((d_in[:, None, None, :, None, None] * H_
            + h_in[None, :, None, None, :, None]) * W_
           + w_in[None, None, :, None, None, :])
    Mpb = Do * Ho * Wo                       # output rows per batch element
    taps = kD * kH * kW
    K_raw = taps * Cin
    K_pad = _round_up(K_raw, 128)            # lane-dense contraction dim
    elem = vox.reshape(Mpb, taps)[:, :, None] * Cin + jnp.arange(Cin)
    elem = elem.reshape(Mpb, K_raw)
    # Padded K columns alias element 0; the matching (zero) weight rows kill
    # their contribution, so A needs no explicit zero fill.  Padded M rows
    # also alias element 0 and are sliced away after the call.
    tm = min(m_tile_rows, _round_up(Mpb, 8))
    Mpb_pad = _round_up(Mpb, tm)
    elem = jnp.pad(elem, ((0, Mpb_pad - Mpb), (0, K_pad - K_raw)))

    dot_dtype = compute_dtype if compute_dtype is not None else x.dtype
    a = jnp.take(x_cl.reshape(N, D_ * H_ * W_ * Cin), elem.reshape(-1), axis=1)
    a = a.reshape(N * Mpb_pad, K_pad).astype(dot_dtype)

    # ---- Weights / bias: (kd, kh, kw, cin) -> K rows, Cout padded to 128. --
    Cout_pad = _round_up(Cout, 128)
    w_t = jnp.transpose(weight, (2, 3, 4, 1, 0)).reshape(K_raw, Cout)
    w_p = jnp.pad(w_t, ((0, K_pad - K_raw), (0, Cout_pad - Cout)))
    w_p = w_p.astype(dot_dtype)   # NOTE: weights follow the activation dtype.
    if bias is None:
        bias = jnp.zeros((Cout,), jnp.float32)
    b_p = jnp.pad(bias.astype(jnp.float32),
                  (0, Cout_pad - Cout)).reshape(1, Cout_pad)

    # ---- Tiled GEMM grid: M "parallel", K innermost reduction. -------------
    M_tot = N * Mpb_pad
    if K_pad <= 1024:
        tk = K_pad
    else:
        tk = next(c for c in (512, 384, 256, 128) if K_pad % c == 0)
    num_m, num_k = M_tot // tm, K_pad // tk

    out_dtype = x.dtype
    in_item = jnp.dtype(dot_dtype).itemsize
    out_item = jnp.dtype(out_dtype).itemsize
    cost = pl.CostEstimate(
        flops=2 * M_tot * K_pad * Cout_pad,
        transcendentals=0,
        bytes_accessed=(M_tot * K_pad + K_pad * Cout_pad) * in_item
        + Cout_pad * 4 + M_tot * Cout_pad * out_item)

    out = pl.pallas_call(
        _gemm_bias_kernel,
        out_shape=jax.ShapeDtypeStruct((M_tot, Cout_pad), out_dtype),
        grid=(num_m, num_k),
        in_specs=[
            pl.BlockSpec((tm, tk), lambda m, k: (m, k)),
            pl.BlockSpec((tk, Cout_pad), lambda m, k: (k, 0)),
            pl.BlockSpec((1, Cout_pad), lambda m, k: (0, 0)),
        ],
        out_specs=pl.BlockSpec((tm, Cout_pad), lambda m, k: (m, 0)),
        scratch_shapes=[pltpu.VMEM((tm, Cout_pad), jnp.float32)],
        compiler_params=pltpu.CompilerParams(
            dimension_semantics=("parallel", "arbitrary"),
            vmem_limit_bytes=48 * 1024 * 1024),
        cost_estimate=cost,
    )(a, w_p, b_p)

    # Drop M / Cout padding, restore NCDHW.
    out = out.reshape(N, Mpb_pad, Cout_pad)[:, :Mpb, :Cout]
    out = out.reshape(N, Do, Ho, Wo, Cout)
    return jnp.transpose(out, (0, 4, 1, 2, 3))


if __name__ == "__main__":
    # Config consistent with SamePadConv3D(in_channels=4, out_channels=8,
    # kernel_size=3, bias=True, padding_type='replicate').
    N, Cin, Cout = 2, 4, 8
    D = H = W = 8
    kD = kH = kW = 3

    key = jax.random.PRNGKey(0)
    kx, kw_, kb = jax.random.split(key, 3)
    x = jax.random.normal(kx, (N, Cin, D, H, W), dtype=jnp.float32)
    fan_in = Cin * kD * kH * kW
    weight = jax.random.uniform(kw_, (Cout, Cin, kD, kH, kW), jnp.float32,
                                minval=-1.0, maxval=1.0) / jnp.sqrt(fan_in)
    bias = jax.random.uniform(kb, (Cout,), jnp.float32,
                              minval=-1.0, maxval=1.0) / jnp.sqrt(fan_in)

    def reference(x, weight, bias, stride):
        sD, sH, sW = stride

        def _lr(k, s):
            p = k - s
            return (p // 2 + p % 2, p // 2)

        x_p = jnp.pad(x, ((0, 0), (0, 0), _lr(kD, sD), _lr(kH, sH), _lr(kW, sW)),
                      mode="edge")
        ref = jax.lax.conv_general_dilated(
            x_p, weight, window_strides=stride, padding="VALID",
            dimension_numbers=("NCDHW", "OIDHW", "NCDHW"))
        return ref + bias.reshape(1, Cout, 1, 1, 1)

    for stride in ((1, 1, 1), (2, 2, 2)):
        out = jax.block_until_ready(
            same_pad_conv3d(x, weight, bias, stride=stride,
                            padding_type="replicate"))
        ref = reference(x, weight, bias, stride)
        assert out.shape == ref.shape, (stride, out.shape, ref.shape)
        err = float(jnp.max(jnp.abs(out - ref)))
        assert jnp.allclose(out, ref, atol=1e-4, rtol=1e-4), (stride, err)

    print("KERNEL_OK")
</pallas_src>

<mosaic_0001>
module attributes {stable_mosaic.version = 11 : i64} {
  func.func @_gemm_bias_kernel(%arg0: i32, %arg1: i32, %arg2: memref<512x128xf32, #tpu.memory_space<vmem>>, %arg3: memref<128x128xf32, #tpu.memory_space<vmem>>, %arg4: memref<1x128xf32, #tpu.memory_space<vmem>>, %arg5: memref<512x128xf32, #tpu.memory_space<vmem>>, %arg6: memref<512x128xf32, #tpu.memory_space<vmem>>) attributes {dimension_semantics = [#tpu.dimension_semantics<parallel>, #tpu.dimension_semantics<arbitrary>], iteration_bounds = array<i64: 2, 1>, scalar_prefetch = 0 : i64, scratch_operands = 1 : i64, tpu.core_type = #tpu.core_type<tc>, window_params = [{transform_indices = @transform_0, window_bounds = array<i64: 512, 128>}, {transform_indices = @transform_1, window_bounds = array<i64: 128, 128>}, {pipeline_mode = #tpu.pipeline_mode<synchronous>, transform_indices = @transform_2, window_bounds = array<i64: 1, 128>}, {transform_indices = @transform_3, window_bounds = array<i64: 512, 128>}]} {
    %c0_i32 = arith.constant 0 : i32
    %0 = arith.cmpi eq, %arg1, %c0_i32 : i32
    %1 = arith.extui %0 : i1 to i32
    %c0_i32_0 = arith.constant 0 : i32
    %2 = arith.cmpi ne, %1, %c0_i32_0 : i32
    scf.if %2 {
      %c0_10 = arith.constant 0 : index
      %c0_11 = arith.constant 0 : index
      %12 = vector.load %arg4[%c0_10, %c0_11] : memref<1x128xf32, #tpu.memory_space<vmem>>, vector<1x128xf32>
      %13 = vector.shape_cast %12 : vector<1x128xf32> to vector<1x128xf32>
      %14 = vector.broadcast %13 : vector<1x128xf32> to vector<512x128xf32>
      %c0_12 = arith.constant 0 : index
      %c0_13 = arith.constant 0 : index
      %15 = vector.load %arg6[%c0_12, %c0_13] : memref<512x128xf32, #tpu.memory_space<vmem>>, vector<512x128xf32>
      tpu.vector_store %arg6[%c0_12, %c0_13], %14 {strides = array<i32>} : memref<512x128xf32, #tpu.memory_space<vmem>>, vector<512x128xf32>,
    } else {
    }
    %c0 = arith.constant 0 : index
    %c0_1 = arith.constant 0 : index
    %3 = vector.load %arg6[%c0, %c0_1] : memref<512x128xf32, #tpu.memory_space<vmem>>, vector<512x128xf32>
    %c0_2 = arith.constant 0 : index
    %c0_3 = arith.constant 0 : index
    %4 = vector.load %arg2[%c0_2, %c0_3] : memref<512x128xf32, #tpu.memory_space<vmem>>, vector<512x128xf32>
    %c0_4 = arith.constant 0 : index
    %c0_5 = arith.constant 0 : index
    %5 = vector.load %arg3[%c0_4, %c0_5] : memref<128x128xf32, #tpu.memory_space<vmem>>, vector<128x128xf32>
    %cst = arith.constant dense<0.000000e+00> : vector<512x128xf32>
    %6 = tpu.matmul %4, %5, %cst {dimension_numbers = #tpu.dot_dimension_numbers<[1], [0], [0], [1], [0, 0, 1, 1], [], []>} : vector<512x128xf32>, vector<128x128xf32>, vector<512x128xf32> -> vector<512x128xf32>
    %7 = arith.addf %3, %6 : vector<512x128xf32>
    %c0_6 = arith.constant 0 : index
    %c0_7 = arith.constant 0 : index
    %8 = vector.load %arg6[%c0_6, %c0_7] : memref<512x128xf32, #tpu.memory_space<vmem>>, vector<512x128xf32>
    tpu.vector_store %arg6[%c0_6, %c0_7], %7 {strides = array<i32>} : memref<512x128xf32, #tpu.memory_space<vmem>>, vector<512x128xf32>,
    %c0_i32_8 = arith.constant 0 : i32
    %9 = arith.cmpi eq, %arg1, %c0_i32_8 : i32
    %10 = arith.extui %9 : i1 to i32
    %c0_i32_9 = arith.constant 0 : i32
    %11 = arith.cmpi ne, %10, %c0_i32_9 : i32
    scf.if %11 {
      %c0_10 = arith.constant 0 : index
      %c0_11 = arith.constant 0 : index
      %12 = vector.load %arg6[%c0_10, %c0_11] : memref<512x128xf32, #tpu.memory_space<vmem>>, vector<512x128xf32>
      %c0_12 = arith.constant 0 : index
      %c0_13 = arith.constant 0 : index
      %13 = vector.load %arg5[%c0_12, %c0_13] : memref<512x128xf32, #tpu.memory_space<vmem>>, vector<512x128xf32>
      tpu.vector_store %arg5[%c0_12, %c0_13], %12 {strides = array<i32>} : memref<512x128xf32, #tpu.memory_space<vmem>>, vector<512x128xf32>,
    } else {
    }
    return
  }
  func.func @transform_0(%arg0: i32, %arg1: i32) -> (i32, i32) {
    %c0_i32 = arith.constant 0 : i32
    return %arg0, %arg1 : i32, i32
  }
  func.func @transform_1(%arg0: i32, %arg1: i32) -> (i32, i32) {
    %c0_i32 = arith.constant 0 : i32
    %c0_i32_0 = arith.constant 0 : i32
    return %arg1, %c0_i32 : i32, i32
  }
  func.func @transform_2(%arg0: i32, %arg1: i32) -> (i32, i32) {
    %c0_i32 = arith.constant 0 : i32
    %c0_i32_0 = arith.constant 0 : i32
    %c0_i32_1 = arith.constant 0 : i32
    return %c0_i32, %c0_i32_0 : i32, i32
  }
  func.func @transform_3(%arg0: i32, %arg1: i32) -> (i32, i32) {
    %c0_i32 = arith.constant 0 : i32
    %c0_i32_0 = arith.constant 0 : i32
    return %arg0, %c0_i32 : i32, i32
  }
}

</mosaic_0001>

<bundles_post_ra>
// kernel: tpu_custom_call.1
= control target key start
LH: loop header
LB: loop body
LE: loop exit
PB: predicated region body
PF: predicated region fallthrough
CT: control target
= control target key end

     0   :  { %8 = vsyncpa [#allocation4], 0  ;;  %s2099_s0 = inlined_call_operand.hbm [shape: f32[1024,128], index: 0, kind: input, shape index: {}]   ;;  %s2100_s1 = inlined_call_operand.hbm [shape: f32[128,128], index: 1, kind: input, shape index: {}]   ;;  %s2101_s2 = inlined_call_operand.vmem [shape: f32[1,128], index: 2, kind: input, shape index: {}]   ;;  %s2102_s3 = inlined_call_operand.hbm [shape: f32[1024,128], index: 3, kind: output, shape index: {}]  }
   0x1   :  { %10 = vsyncpa [#allocation4 + $0x1], 0 }
   0x2   :  { %11 = vsyncpa [#allocation7], 0 }
   0x3   :  { %12 = vsyncpa [#allocation5], 0 }
   0x4   :  { %14 = vsyncpa [#allocation5 + $0x1], 0  ;;  %s1706_s12 = smov 0   ;;  %s1708_s13 = smov 0  }
   0x5   :  { %s1710_s14 = smov 0   ;;  %s1712_s15 = smov 0  }
   0x6   :  { %s1714_s16 = smov 0   ;;  %s1716_s17 = smov 0  }
   0x7 LB: > { %s1202_s18 = sadd.s32 4294967295, %s1677_s17   ;;  %s1203_s19 = sadd.s32 4294967294, %s1677_s17   ;;  %s1677_s17 = sphi %s1716_s17, %s20_s17   ;;  %s1673_s16 = sphi %s1714_s16, %s2124_s16   ;;  %s1669_s15 = sphi %s1712_s15, %s2123_s15   ;;  %s1665_s14 = sphi %s1710_s14, %s2122_s14   ;;  %s1661_s13 = sphi %s1708_s13, %s2121_s13   ;;  %s1657_s12 = sphi %s1706_s12, %s2120_s12  }
   0x8   : > { %p54_p0 = scmp.ne.s32.totalorder %s1661_s13, %s1657_s12  ;;  %p1740_p1 = scmp.eq.s32.totalorder %s1202_s18, 0 }
   0x9   : > { %p1744_p2 = scmp.eq.s32.totalorder %s1202_s18, 1  ;;  %p131_p3 = scmp.eq.s32.totalorder %s1203_s19, 1 }
   0xa   : > { %p1750_p4 = por %p1740_p1, %p54_p0  ;;  %p1204_p5 = scmp.ge.s32.totalorder %s1677_s17, 1 }
   0xb   : > { %p1755_p6 = por %p131_p3, %p54_p0  ;;  %p138_p7 = scmp.lt.s32.totalorder %s1677_s17, 3 }
   0xc   : > { %s2108_s22 = scalar_select %p1750_p4, 1, 0 }
   0xd   : > { %s2109_s23 = scalar_select %p1755_p6, 1, 0 }
   0xe   : > { %p1760_p8 = pnand %p1204_p5, %p138_p7  ;;  %s1679_s25 = smov [#allocation6]  }
   0xf   : > { %s153_s26 = sshll.u32 %s1679_s25, 4  ;;  %s32_s28 = sadd.s32 1, %s1673_s16  ;;  %s154_s26 = int_to_ptr.vmem [resolvable:$true] %s153_s26 }
  0x10   : > { %p1470_p9 = pneg %p1760_p8  ;;  %s1550_s29 = scalar_lea.vmem %s154_s26, 2048 }
  0x11   : > { %p1551_p13 = scmp.ne.s32.totalorder %s154_s26, %s1550_s29  ;;  %p1558_p5 = scmp.lt.s32.totalorder %s154_s26, %s154_s26 }
  0x12   : > { %p1769_p11 = pnand %p1470_p9, %p1740_p1  ;;  %p1559_p7 = scmp.lt.s32.totalorder %s1550_s29, %s1550_s29 }
  0x14   : > { %p1541_p12 = pneg %p1769_p11  ;;  %p1560_p6 = por %p1559_p7, %p1558_p5 }
  0x16   : > { %p1553_p0 = pnand %p1551_p13, %p1541_p12 }
  0x18   : > { %p1554_p3 = pneg %p1553_p0 }
  0x1a   : > { %p1561_p4 = pnand %p1560_p6, %p1554_p3 }
  0x1c   : > { %1564 = shalt.err (!%p1561_p4)
}
  0x1d   : > { %s2104_s30 = smov 128   ;;  %s2105_s4 = smov 8  }
  0x1e   : > { %1473 = dma.hbm_to_vmem [thread:$0]  (!%p1769_p11), %s2100_s1, 2048, %s154_s26, [#allocation7], %s2104_s30, %s2104_s30, %s2105_s4  }
  0x1f   : > { %p34_p4 = scmp.ge.s32.totalorder %s32_s28, 2  ;;  %s41_s7 = sadd.s32 1, %s1665_s14 }
  0x20   : > { %p48_p6 = scmp.ne.s32.totalorder %s1665_s14, %s1661_s13  ;;  %p49_p9 = scmp.eq.s32.totalorder %s1677_s17, 0 }
  0x21   : > { %s2126_s28 = smov (%p34_p4, %s32_s28), 0  ;;  %p1483_p0 = scmp.lt.s32.totalorder %s1677_s17, 2 }
  0x22   : > { %p1790_p12 = por %p49_p9, %p48_p6  ;;  %p1796_p13 = por %p1744_p2, %p48_p6 }
  0x23   : > { %s36_s10 = ssub.s32 %s1673_s16, %s2126_s28  ;;  %s170_s11 = sand.u32 1, %s1665_s14  }
  0x24   : > { %p39_p11 = scmp.eq.s32.totalorder %s36_s10, 0  ;;  %s1207_s18 = sshll.u32 %s170_s11, 9 }
  0x25   : > { %s1220_s25 = sshll.u32 %s1673_s16, 13  ;;  %s174_s5 = scalar_lea.vmem [#allocation3], %s1207_s18 }
  0x26   : > { %s1805_s19 = scalar_select %p39_p11, %s1665_s14, %s41_s7  }
  0x27   : > { %s181_s29 = scalar_lea.hbm %s2099_s0, %s1220_s25  ;;  %s182_s6 = sshll.u32 %s174_s5, 4  ;;  %s183_s6 = int_to_ptr.vmem [resolvable:$true] %s182_s6 }
  0x28   : > { %p1813_p2 = pnand %p1483_p0, %p1790_p12  ;;  %s171_s30 = scalar_lea.sflag [#allocation4], %s170_s11 }
  0x29   : > { %s1578_s10 = scalar_lea.vmem %s183_s6, 8192  ;;  %s1682_s7 = smov [#allocation3]  }
  0x2a   : > { %p1567_p3 = pneg %p1813_p2  ;;  %p1579_p5 = scmp.ne.s32.totalorder %s183_s6, %s1578_s10 }
  0x2b   : > { %s1583_s4 = sshll.u32 %s1682_s7, 4  ;;  %s1584_s4 = int_to_ptr.vmem [resolvable:$false] %s1583_s4 }
  0x2c   : > { %p1581_p7 = pnand %p1579_p5, %p1567_p3  ;;  %s1585_s25 = scalar_lea.vmem %s1584_s4, 16384 }
  0x2d   : > { %p1586_p6 = scmp.lt.s32.totalorder %s183_s6, %s1584_s4  ;;  %p1587_p9 = scmp.lt.s32.totalorder %s1585_s25, %s1578_s10 }
  0x2e   : > { %p1582_p4 = pneg %p1581_p7 }
  0x2f   : > { %p1588_p11 = por %p1587_p9, %p1586_p6 }
  0x31   : > { %p1589_p10 = pnand %p1588_p11, %p1582_p4 }
  0x33   : > { %1592 = shalt.err (!%p1589_p10)
}
  0x34   : > { %s2115_s8 = smov 8   ;;  %s2116_s18 = smov 128  }
  0x35   : > { %1477 = dma.hbm_to_vmem [thread:$0]  (!%p1813_p2), %s181_s29, 8192, %s183_s6, %s171_s30, %s2116_s18, %s2116_s18, %s2115_s8  }
  0x36   : > { %194 = sbr.rel (%p1760_p8) target bundleno = 367 (0x16f), region = 32  ;;  %s1827_s11 = sand.u32 (!%p1760_p8), 1, %s1661_s13  }
  0x37   : > { %s1211_s4 = sshll.u32 (!%p1760_p8), %s1827_s11, 9  ;;  %s197_s26 = scalar_lea.sflag (!%p1760_p8), [#allocation4], %s1827_s11 }
  0x38   : > { %s1833_s27 = scalar_lea.vmem (!%p1760_p8), [#allocation3], %s1211_s4  ;;  %p2117_p10 = scmp.ne.s32.totalorder (!%p1760_p8), %s2108_s22, 0 }
  0x3b   : > { %1644 = dma.done.wait (%p2117_p10), %s197_s26, 8192  }
  0x3c   : > { %1646 = vsyncadd (%p2117_p10), %s197_s26, 4294959104 }
  0x3d   : > { %1648 = dma.done.wait (%p1740_p1), [#allocation7], 2048  }
  0x3e   : > { %1650 = vsyncadd (%p1740_p1), [#allocation7], 4294965248  ;;  %v448_v0 = vld [vmem:[#allocation6 + $0x78] sm:$0xff]  ;;  %v447_v1 = vld [vmem:[#allocation6 + $0x70] sm:$0xff]  ;;  %s1916_s24 = scalar_lea.vmem [#allocation8], %s1211_s4  ;;  %s1221_s30 = sshll.u32 %s1669_s15, 13 }
  0x3f   : > { %1302 = vmatprep.subr.mxu0 %v448_v0  ;;  %1430 = vmatprep.subr.mxu1 %v448_v0  ;;  %v446_v2 = vld [vmem:[#allocation6 + $0x68] sm:$0xff]  ;;  %v445_v3 = vld [vmem:[#allocation6 + $0x60] sm:$0xff]  ;;  %v444_v4 = vld [vmem:[#allocation6 + $0x58] sm:$0xff]  ;;  %s1107_s29 = sshll.u32 %s1916_s24, 4  ;;  %s2043_s21 = scalar_lea.hbm %s2102_s3, %s1221_s30  ;;  %s2045_s29 = int_to_ptr.vmem [resolvable:$true] %s1107_s29 }
  0x40   : > { %1303 = vmatpush3.msra.mxu0 %v448_v0  ;;  %1446 = vmatpush3.msra.mxu1 %v448_v0  ;;  %v443_v5 = vld [vmem:[#allocation6 + $0x50] sm:$0xff]  ;;  %v442_v6 = vld [vmem:[#allocation6 + $0x48] sm:$0xff]  ;;  %v441_v7 = vld [vmem:[#allocation6 + $0x40] sm:$0xff]  ;;  %s1094_s15 = scalar_lea.sflag [#allocation5], %s1827_s11  ;;  %s1593_s10 = scalar_lea.vmem %s2045_s29, 8192 }
  0x41   : > { %1304 = vmatprep.subr.mxu0 %v447_v1  ;;  %1431 = vmatprep.subr.mxu1 %v447_v1  ;;  %v440_v8 = vld [vmem:[#allocation6 + $0x38] sm:$0xff]  ;;  %v439_v9 = vld [vmem:[#allocation6 + $0x30] sm:$0xff]  ;;  %v438_v10 = vld [vmem:[#allocation6 + $0x28] sm:$0xff]  ;;  %p1594_p1 = scmp.ne.s32.totalorder %s2045_s29, %s1593_s10  ;;  %s1683_s7 = smov [#allocation8]  }
  0x42   : > { %1305 = vmatpush3.msra.mxu0 %v447_v1  ;;  %1447 = vmatpush3.msra.mxu1 %v447_v1  ;;  %v437_v11 = vld [vmem:[#allocation6 + $0x20] sm:$0xff]  ;;  %v436_v12 = vld [vmem:[#allocation6 + $0x18] sm:$0xff]  ;;  %v435_v13 = vld [vmem:[#allocation6 + $0x10] sm:$0xff]  ;;  %s1597_s25 = sshll.u32 %s1683_s7, 4  ;;  %s1598_s25 = int_to_ptr.vmem [resolvable:$false] %s1597_s25 }
  0x43   : > { %1306 = vmatprep.subr.mxu0 %v446_v2  ;;  %1432 = vmatprep.subr.mxu1 %v446_v2  ;;  %v434_v14 = vld [vmem:[#allocation6 + $0x8] sm:$0xff]  ;;  %v433_v15 = vld [vmem:[#allocation6] sm:$0xff]  ;;  %v371_v20 = vld [vmem:[%s1833_s27 + $0x10] sm:$0xff]  ;;  %p1595_p8 = pnand %p1594_p1, %p1796_p13  ;;  %s1599_s8 = scalar_lea.vmem %s1598_s25, 16384 }
  0x44   : > { %1307 = vmatpush3.msra.mxu0 %v446_v2  ;;  %1448 = vmatpush3.msra.mxu1 %v446_v2  ;;  %v369_v16 = vld [vmem:[%s1833_s27] sm:$0xff]  ;;  %v370_v18 = vld [vmem:[%s1833_s27 + $0x8] sm:$0xff]  ;;  %v403_v21 = vld [vmem:[%s1833_s27 + $0x110] sm:$0xff]  ;;  %p1600_p0 = scmp.lt.s32.totalorder %s2045_s29, %s1598_s25  ;;  %p1601_p2 = scmp.lt.s32.totalorder %s1599_s8, %s1593_s10 }
  0x45   : > { %1308 = vmatprep.subr.mxu0 %v445_v3  ;;  %1433 = vmatprep.subr.mxu1 %v445_v3  ;;  %v401_v17 = vld [vmem:[%s1833_s27 + $0x100] sm:$0xff]  ;;  %v402_v19 = vld [vmem:[%s1833_s27 + $0x108] sm:$0xff]  ;;  %v372_v22 = vld [vmem:[%s1833_s27 + $0x18] sm:$0xff]  ;;  %p1596_p12 = pneg %p1595_p8 }
  0x46   : > { %1309 = vmatpush3.msra.mxu0 %v445_v3  ;;  %1449 = vmatpush3.msra.mxu1 %v445_v3  ;;  %v404_v23 = vld [vmem:[%s1833_s27 + $0x118] sm:$0xff]  ;;  %v373_v24 = vld [vmem:[%s1833_s27 + $0x20] sm:$0xff]  ;;  %v374_v26 = vld [vmem:[%s1833_s27 + $0x28] sm:$0xff]  ;;  %p1602_p3 = por %p1601_p2, %p1600_p0 }
  0x47   : > { %1310 = vmatprep.subr.mxu0 %v444_v4  ;;  %1434 = vmatprep.subr.mxu1 %v444_v4  ;;  %v405_v25 = vld [vmem:[%s1833_s27 + $0x120] sm:$0xff]  ;;  %v406_v27 = vld [vmem:[%s1833_s27 + $0x128] sm:$0xff]  ;;  %v375_v28 = vld [vmem:[%s1833_s27 + $0x30] sm:$0xff] }
  0x48   : > { %1311 = vmatpush3.msra.mxu0 %v444_v4  ;;  %1450 = vmatpush3.msra.mxu1 %v444_v4  ;;  %v407_v29 = vld [vmem:[%s1833_s27 + $0x130] sm:$0xff]  ;;  %v376_v30 = vld [vmem:[%s1833_s27 + $0x38] sm:$0xff]  ;;  %v377_v32 = vld [vmem:[%s1833_s27 + $0x40] sm:$0xff]  ;;  %p1603_p5 = pnand %p1602_p3, %p1596_p12 }
  0x49   : > { %1312 = vmatprep.subr.mxu0 %v443_v5  ;;  %1435 = vmatprep.subr.mxu1 %v443_v5  ;;  %v408_v31 = vld [vmem:[%s1833_s27 + $0x138] sm:$0xff]  ;;  %v409_v33 = vld [vmem:[%s1833_s27 + $0x140] sm:$0xff]  ;;  %v378_v34 = vld [vmem:[%s1833_s27 + $0x48] sm:$0xff] }
  0x4a   : > { %1313 = vmatpush3.msra.mxu0 %v443_v5  ;;  %1451 = vmatpush3.msra.mxu1 %v443_v5  ;;  %v410_v35 = vld [vmem:[%s1833_s27 + $0x148] sm:$0xff]  ;;  %v379_v36 = vld [vmem:[%s1833_s27 + $0x50] sm:$0xff]  ;;  %v380_v38 = vld [vmem:[%s1833_s27 + $0x58] sm:$0xff] }
  0x4b   : > { %1314 = vmatprep.subr.mxu0 %v442_v6  ;;  %1436 = vmatprep.subr.mxu1 %v442_v6  ;;  %v411_v37 = vld [vmem:[%s1833_s27 + $0x150] sm:$0xff]  ;;  %v412_v39 = vld [vmem:[%s1833_s27 + $0x158] sm:$0xff]  ;;  %v381_v40 = vld [vmem:[%s1833_s27 + $0x60] sm:$0xff] }
  0x4c   : > { %1315 = vmatpush3.msra.mxu0 %v442_v6  ;;  %1452 = vmatpush3.msra.mxu1 %v442_v6  ;;  %v413_v41 = vld [vmem:[%s1833_s27 + $0x160] sm:$0xff]  ;;  %v382_v42 = vld [vmem:[%s1833_s27 + $0x68] sm:$0xff]  ;;  %v383_v44 = vld [vmem:[%s1833_s27 + $0x70] sm:$0xff] }
  0x4d   : > { %1316 = vmatprep.subr.mxu0 %v441_v7  ;;  %1437 = vmatprep.subr.mxu1 %v441_v7  ;;  %v414_v43 = vld [vmem:[%s1833_s27 + $0x168] sm:$0xff]  ;;  %v415_v45 = vld [vmem:[%s1833_s27 + $0x170] sm:$0xff]  ;;  %v384_v46 = vld [vmem:[%s1833_s27 + $0x78] sm:$0xff] }
  0x4e   : > { %1317 = vmatpush3.msra.mxu0 %v441_v7  ;;  %1453 = vmatpush3.msra.mxu1 %v441_v7  ;;  %v416_v47 = vld [vmem:[%s1833_s27 + $0x178] sm:$0xff]  ;;  %v385_v48 = vld [vmem:[%s1833_s27 + $0x80] sm:$0xff]  ;;  %v386_v50 = vld [vmem:[%s1833_s27 + $0x88] sm:$0xff] }
  0x4f   : > { %1318 = vmatprep.subr.mxu0 %v440_v8  ;;  %1438 = vmatprep.subr.mxu1 %v440_v8  ;;  %v417_v49 = vld [vmem:[%s1833_s27 + $0x180] sm:$0xff]  ;;  %v418_v51 = vld [vmem:[%s1833_s27 + $0x188] sm:$0xff]  ;;  %v387_v52 = vld [vmem:[%s1833_s27 + $0x90] sm:$0xff] }
  0x50   : > { %1319 = vmatpush3.msra.mxu0 %v440_v8  ;;  %1454 = vmatpush3.msra.mxu1 %v440_v8  ;;  %v419_v53 = vld [vmem:[%s1833_s27 + $0x190] sm:$0xff]  ;;  %v388_v54 = vld [vmem:[%s1833_s27 + $0x98] sm:$0xff]  ;;  %v389_v56 = vld [vmem:[%s1833_s27 + $0xa0] sm:$0xff] }
  0x51   : > { %1320 = vmatprep.subr.mxu0 %v439_v9  ;;  %1439 = vmatprep.subr.mxu1 %v439_v9  ;;  %v420_v55 = vld [vmem:[%s1833_s27 + $0x198] sm:$0xff]  ;;  %v421_v57 = vld [vmem:[%s1833_s27 + $0x1a0] sm:$0xff]  ;;  %v390_v58 = vld [vmem:[%s1833_s27 + $0xa8] sm:$0xff] }
  0x52   : > { %1321 = vmatpush3.msra.mxu0 %v439_v9  ;;  %1455 = vmatpush3.msra.mxu1 %v439_v9  ;;  %v422_v59 = vld [vmem:[%s1833_s27 + $0x1a8] sm:$0xff]  ;;  %v391_v60 = vld [vmem:[%s1833_s27 + $0xb0] sm:$0xff]  ;;  %v392_v62 = vld [vmem:[%s1833_s27 + $0xb8] sm:$0xff] }
  0x53   : > { %1322 = vmatprep.subr.mxu0 %v438_v10  ;;  %1440 = vmatprep.subr.mxu1 %v438_v10  ;;  %v423_v61 = vld [vmem:[%s1833_s27 + $0x1b0] sm:$0xff]  ;;  %v424_v63 = vld [vmem:[%s1833_s27 + $0x1b8] sm:$0xff]  ;;  %v393_v0 = vld [vmem:[%s1833_s27 + $0xc0] sm:$0xff] }
  0x54   : > { %1323 = vmatpush3.msra.mxu0 %v438_v10  ;;  %1456 = vmatpush3.msra.mxu1 %v438_v10  ;;  %v425_v1 = vld [vmem:[%s1833_s27 + $0x1c0] sm:$0xff]  ;;  %v394_v2 = vld [vmem:[%s1833_s27 + $0xc8] sm:$0xff]  ;;  %v395_v4 = vld [vmem:[%s1833_s27 + $0xd0] sm:$0xff] }
  0x55   : > { %1324 = vmatprep.subr.mxu0 %v437_v11  ;;  %1441 = vmatprep.subr.mxu1 %v437_v11  ;;  %v426_v3 = vld [vmem:[%s1833_s27 + $0x1c8] sm:$0xff]  ;;  %v427_v5 = vld [vmem:[%s1833_s27 + $0x1d0] sm:$0xff]  ;;  %v396_v6 = vld [vmem:[%s1833_s27 + $0xd8] sm:$0xff] }
  0x56   : > { %1325 = vmatpush3.msra.mxu0 %v437_v11  ;;  %1457 = vmatpush3.msra.mxu1 %v437_v11  ;;  %v428_v7 = vld [vmem:[%s1833_s27 + $0x1d8] sm:$0xff]  ;;  %v397_v8 = vld [vmem:[%s1833_s27 + $0xe0] sm:$0xff]  ;;  %v398_v10 = vld [vmem:[%s1833_s27 + $0xe8] sm:$0xff] }
  0x57   : > { %1326 = vmatprep.subr.mxu0 %v436_v12  ;;  %1442 = vmatprep.subr.mxu1 %v436_v12  ;;  %v429_v9 = vld [vmem:[%s1833_s27 + $0x1e0] sm:$0xff]  ;;  %v430_v11 = vld [vmem:[%s1833_s27 + $0x1e8] sm:$0xff] }
  0x58   : > { %1327 = vmatpush3.msra.mxu0 %v436_v12  ;;  %1458 = vmatpush3.msra.mxu1 %v436_v12  ;;  %v399_v12 = vld [vmem:[%s1833_s27 + $0xf0] sm:$0xff] }
  0x59   : > { %1328 = vmatprep.subr.mxu0 %v435_v13  ;;  %1443 = vmatprep.subr.mxu1 %v435_v13 }
  0x5a   : > { %1329 = vmatpush3.msra.mxu0 %v435_v13  ;;  %1459 = vmatpush3.msra.mxu1 %v435_v13  ;;  %v431_v13 = vld [vmem:[%s1833_s27 + $0x1f0] sm:$0xff] }
  0x5b   : > { %1330 = vmatprep.subr.mxu0 %v434_v14  ;;  %1444 = vmatprep.subr.mxu1 %v434_v14 }
  0x5c   : > { %1331 = vmatpush3.msra.mxu0 %v434_v14  ;;  %1460 = vmatpush3.msra.mxu1 %v434_v14  ;;  %v400_v14 = vld [vmem:[%s1833_s27 + $0xf8] sm:$0xff] }
  0x5d   : > { %1332 = vmatprep.subr.mxu0 %v433_v15  ;;  %1445 = vmatprep.subr.mxu1 %v433_v15 }
  0x5e   : > { %1333 = vmatpush3.msra.mxu0 %v433_v15  ;;  %1461 = vmatpush3.msra.mxu1 %v433_v15  ;;  %v432_v15 = vld [vmem:[%s1833_s27 + $0x1f8] sm:$0xff] }
  0x5f   : > { %1334 = vmatprep.mubr.f32.mxu0 %v369_v16  ;;  %1382 = vmatprep.mubr.f32.mxu1 %v401_v17  ;;  %v1910_v16 = vld [vmem:[%s2101_s2] ss:$0 sm:$0xff] }
  0x60   : > { %1335 = vmatmul.mubr.f32.vlgmr.msra.gmra.mxu0 %v370_v18  ;;  %1383 = vmatmul.mubr.f32.vlgmr.msra.gmra.mxu1 %v402_v19 }
  0x61   : > { %1337 = vmatprep.mubr.f32.mxu0 %v371_v20  ;;  %1385 = vmatprep.mubr.f32.mxu1 %v403_v21 }
  0x64   : > { %1338 = vmatmul.mubr.f32.gmra.mxu0 %v372_v22  ;;  %1386 = vmatmul.mubr.f32.gmra.mxu1 %v404_v23 }
  0x65   : > { %1340 = vmatprep.mubr.f32.mxu0 %v373_v24  ;;  %1388 = vmatprep.mubr.f32.mxu1 %v405_v25 }
  0x68   : > { %1341 = vmatmul.mubr.f32.gmra.mxu0 %v374_v26  ;;  %1389 = vmatmul.mubr.f32.gmra.mxu1 %v406_v27 }
  0x69   : > { %1343 = vmatprep.mubr.f32.mxu0 %v375_v28  ;;  %1391 = vmatprep.mubr.f32.mxu1 %v407_v29 }
  0x6c   : > { %1344 = vmatmul.mubr.f32.gmra.mxu0 %v376_v30  ;;  %1392 = vmatmul.mubr.f32.gmra.mxu1 %v408_v31 }
  0x6d   : > { %1346 = vmatprep.mubr.f32.mxu0 %v377_v32  ;;  %1394 = vmatprep.mubr.f32.mxu1 %v409_v33 }
  0x70   : > { %1347 = vmatmul.mubr.f32.gmra.mxu0 %v378_v34  ;;  %1395 = vmatmul.mubr.f32.gmra.mxu1 %v410_v35 }
  0x71   : > { %1349 = vmatprep.mubr.f32.mxu0 %v379_v36  ;;  %1397 = vmatprep.mubr.f32.mxu1 %v411_v37 }
  0x74   : > { %1350 = vmatmul.mubr.f32.gmra.mxu0 %v380_v38  ;;  %1398 = vmatmul.mubr.f32.gmra.mxu1 %v412_v39 }
  0x75   : > { %1352 = vmatprep.mubr.f32.mxu0 %v381_v40  ;;  %1400 = vmatprep.mubr.f32.mxu1 %v413_v41 }
  0x78   : > { %1353 = vmatmul.mubr.f32.gmra.mxu0 %v382_v42  ;;  %1401 = vmatmul.mubr.f32.gmra.mxu1 %v414_v43 }
  0x79   : > { %1355 = vmatprep.mubr.f32.mxu0 %v383_v44  ;;  %1403 = vmatprep.mubr.f32.mxu1 %v415_v45 }
  0x7c   : > { %1356 = vmatmul.mubr.f32.gmra.mxu0 %v384_v46  ;;  %1404 = vmatmul.mubr.f32.gmra.mxu1 %v416_v47 }
  0x7d   : > { %1358 = vmatprep.mubr.f32.mxu0 %v385_v48  ;;  %1406 = vmatprep.mubr.f32.mxu1 %v417_v49 }
  0x80   : > { %1359 = vmatmul.mubr.f32.gmra.mxu0 %v386_v50  ;;  %1407 = vmatmul.mubr.f32.gmra.mxu1 %v418_v51 }
  0x81   : > { %1361 = vmatprep.mubr.f32.mxu0 %v387_v52  ;;  %1409 = vmatprep.mubr.f32.mxu1 %v419_v53 }
  0x84   : > { %1362 = vmatmul.mubr.f32.gmra.mxu0 %v388_v54  ;;  %1410 = vmatmul.mubr.f32.gmra.mxu1 %v420_v55 }
  0x85   : > { %1364 = vmatprep.mubr.f32.mxu0 %v389_v56  ;;  %1412 = vmatprep.mubr.f32.mxu1 %v421_v57 }
  0x88   : > { %1365 = vmatmul.mubr.f32.gmra.mxu0 %v390_v58  ;;  %1413 = vmatmul.mubr.f32.gmra.mxu1 %v422_v59 }
  0x89   : > { %1367 = vmatprep.mubr.f32.mxu0 %v391_v60  ;;  %1415 = vmatprep.mubr.f32.mxu1 %v423_v61 }
  0x8c   : > { %1368 = vmatmul.mubr.f32.gmra.mxu0 %v392_v62  ;;  %1416 = vmatmul.mubr.f32.gmra.mxu1 %v424_v63 }
  0x8d   : > { %1370 = vmatprep.mubr.f32.mxu0 %v393_v0  ;;  %1418 = vmatprep.mubr.f32.mxu1 %v425_v1 }
  0x90   : > { %1371 = vmatmul.mubr.f32.gmra.mxu0 %v394_v2  ;;  %1419 = vmatmul.mubr.f32.gmra.mxu1 %v426_v3 }
  0x91   : > { %1373 = vmatprep.mubr.f32.mxu0 %v395_v4  ;;  %1421 = vmatprep.mubr.f32.mxu1 %v427_v5 }
  0x94   : > { %1374 = vmatmul.mubr.f32.gmra.mxu0 %v396_v6  ;;  %1422 = vmatmul.mubr.f32.gmra.mxu1 %v428_v7 }
  0x95   : > { %1376 = vmatprep.mubr.f32.mxu0 %v397_v8  ;;  %1424 = vmatprep.mubr.f32.mxu1 %v429_v9 }
  0x98   : > { %1377 = vmatmul.mubr.f32.gmra.mxu0 %v398_v10  ;;  %1425 = vmatmul.mubr.f32.gmra.mxu1 %v430_v11 }
  0x99   : > { %1379 = vmatprep.mubr.f32.mxu0 %v399_v12  ;;  %1427 = vmatprep.mubr.f32.mxu1 %v431_v13 }
  0x9c   : > { %1380 = vmatmul.mubr.f32.gmra.mxu0 %v400_v14  ;;  %1428 = vmatmul.mubr.f32.gmra.mxu1 %v432_v15 }
 0x120   : > { %v1336_v17 = vpop.f32.mrf.mxu0  ;;  %v1384_v18 = vpop.f32.mrf.mxu1 }
 0x121   : > { %v835_v19 = vadd.f32 %v1336_v17, %v1910_v16  ;;  %v867_v20 = vadd.f32 %v1384_v18, %v1910_v16 }
 0x122   : > { %v515_v21 = vpop.f32.mrf.mxu0  ;;  %v675_v22 = vpop.f32.mrf.mxu1 }
 0x123   : > { %1030 = vst [vmem:[%s1916_s24 + $0x8] sm:$0xff] %v835_v19  ;;  %1062 = vst [vmem:[%s1916_s24 + $0x108] sm:$0xff] %v867_v20  ;;  %v834_v23 = vadd.f32 %v1910_v16, %v515_v21  ;;  %v866_v24 = vadd.f32 %v1910_v16, %v675_v22 }
 0x124   : > { %v1339_v25 = vpop.f32.mrf.mxu0  ;;  %v1387_v26 = vpop.f32.mrf.mxu1 }
 0x125   : > { %1029 = vst [vmem:[%s1916_s24] sm:$0xff] %v834_v23  ;;  %1061 = vst [vmem:[%s1916_s24 + $0x100] sm:$0xff] %v866_v24  ;;  %v837_v27 = vadd.f32 %v1339_v25, %v1910_v16  ;;  %v869_v28 = vadd.f32 %v1387_v26, %v1910_v16 }
 0x126   : > { %v525_v29 = vpop.f32.mrf.mxu0  ;;  %v685_v30 = vpop.f32.mrf.mxu1 }
 0x127   : > { %1032 = vst [vmem:[%s1916_s24 + $0x18] sm:$0xff] %v837_v27  ;;  %1064 = vst [vmem:[%s1916_s24 + $0x118] sm:$0xff] %v869_v28  ;;  %v836_v31 = vadd.f32 %v1910_v16, %v525_v29  ;;  %v868_v32 = vadd.f32 %v1910_v16, %v685_v30 }
 0x128   : > { %v1342_v33 = vpop.f32.mrf.mxu0  ;;  %v1390_v34 = vpop.f32.mrf.mxu1 }
 0x129   : > { %1031 = vst [vmem:[%s1916_s24 + $0x10] sm:$0xff] %v836_v31  ;;  %1063 = vst [vmem:[%s1916_s24 + $0x110] sm:$0xff] %v868_v32  ;;  %v839_v35 = vadd.f32 %v1342_v33, %v1910_v16  ;;  %v871_v36 = vadd.f32 %v1390_v34, %v1910_v16 }
 0x12a   : > { %v535_v37 = vpop.f32.mrf.mxu0  ;;  %v695_v38 = vpop.f32.mrf.mxu1 }
 0x12b   : > { %1034 = vst [vmem:[%s1916_s24 + $0x28] sm:$0xff] %v839_v35  ;;  %1066 = vst [vmem:[%s1916_s24 + $0x128] sm:$0xff] %v871_v36  ;;  %v838_v39 = vadd.f32 %v1910_v16, %v535_v37  ;;  %v870_v40 = vadd.f32 %v1910_v16, %v695_v38 }
 0x12c   : > { %v1345_v41 = vpop.f32.mrf.mxu0  ;;  %v1393_v42 = vpop.f32.mrf.mxu1 }
 0x12d   : > { %1033 = vst [vmem:[%s1916_s24 + $0x20] sm:$0xff] %v838_v39  ;;  %1065 = vst [vmem:[%s1916_s24 + $0x120] sm:$0xff] %v870_v40  ;;  %v841_v43 = vadd.f32 %v1345_v41, %v1910_v16  ;;  %v873_v44 = vadd.f32 %v1393_v42, %v1910_v16 }
 0x12e   : > { %v545_v45 = vpop.f32.mrf.mxu0  ;;  %v705_v46 = vpop.f32.mrf.mxu1 }
 0x12f   : > { %1036 = vst [vmem:[%s1916_s24 + $0x38] sm:$0xff] %v841_v43  ;;  %1068 = vst [vmem:[%s1916_s24 + $0x138] sm:$0xff] %v873_v44  ;;  %v840_v47 = vadd.f32 %v1910_v16, %v545_v45  ;;  %v872_v48 = vadd.f32 %v1910_v16, %v705_v46 }
 0x130   : > { %v1348_v49 = vpop.f32.mrf.mxu0  ;;  %v1396_v50 = vpop.f32.mrf.mxu1 }
 0x131   : > { %1035 = vst [vmem:[%s1916_s24 + $0x30] sm:$0xff] %v840_v47  ;;  %1067 = vst [vmem:[%s1916_s24 + $0x130] sm:$0xff] %v872_v48  ;;  %v843_v51 = vadd.f32 %v1348_v49, %v1910_v16  ;;  %v875_v52 = vadd.f32 %v1396_v50, %v1910_v16 }
 0x132   : > { %v555_v53 = vpop.f32.mrf.mxu0  ;;  %v715_v54 = vpop.f32.mrf.mxu1 }
 0x133   : > { %1038 = vst [vmem:[%s1916_s24 + $0x48] sm:$0xff] %v843_v51  ;;  %1070 = vst [vmem:[%s1916_s24 + $0x148] sm:$0xff] %v875_v52  ;;  %v842_v55 = vadd.f32 %v1910_v16, %v555_v53  ;;  %v874_v56 = vadd.f32 %v1910_v16, %v715_v54 }
 0x134   : > { %v1351_v57 = vpop.f32.mrf.mxu0  ;;  %v1399_v58 = vpop.f32.mrf.mxu1 }
 0x135   : > { %1037 = vst [vmem:[%s1916_s24 + $0x40] sm:$0xff] %v842_v55  ;;  %1069 = vst [vmem:[%s1916_s24 + $0x140] sm:$0xff] %v874_v56  ;;  %v845_v59 = vadd.f32 %v1351_v57, %v1910_v16  ;;  %v877_v60 = vadd.f32 %v1399_v58, %v1910_v16 }
 0x136   : > { %v565_v61 = vpop.f32.mrf.mxu0  ;;  %v725_v62 = vpop.f32.mrf.mxu1 }
 0x137   : > { %1040 = vst [vmem:[%s1916_s24 + $0x58] sm:$0xff] %v845_v59  ;;  %1072 = vst [vmem:[%s1916_s24 + $0x158] sm:$0xff] %v877_v60  ;;  %v844_v63 = vadd.f32 %v1910_v16, %v565_v61  ;;  %v876_v0 = vadd.f32 %v1910_v16, %v725_v62 }
 0x138   : > { %v1354_v1 = vpop.f32.mrf.mxu0  ;;  %v1402_v2 = vpop.f32.mrf.mxu1 }
 0x139   : > { %1039 = vst [vmem:[%s1916_s24 + $0x50] sm:$0xff] %v844_v63  ;;  %1071 = vst [vmem:[%s1916_s24 + $0x150] sm:$0xff] %v876_v0  ;;  %v847_v3 = vadd.f32 %v1354_v1, %v1910_v16  ;;  %v879_v4 = vadd.f32 %v1402_v2, %v1910_v16 }
 0x13a   : > { %v575_v5 = vpop.f32.mrf.mxu0  ;;  %v735_v6 = vpop.f32.mrf.mxu1 }
 0x13b   : > { %1042 = vst [vmem:[%s1916_s24 + $0x68] sm:$0xff] %v847_v3  ;;  %1074 = vst [vmem:[%s1916_s24 + $0x168] sm:$0xff] %v879_v4  ;;  %v846_v7 = vadd.f32 %v1910_v16, %v575_v5  ;;  %v878_v8 = vadd.f32 %v1910_v16, %v735_v6 }
 0x13c   : > { %v1357_v9 = vpop.f32.mrf.mxu0  ;;  %v1405_v10 = vpop.f32.mrf.mxu1 }
 0x13d   : > { %1041 = vst [vmem:[%s1916_s24 + $0x60] sm:$0xff] %v846_v7  ;;  %1073 = vst [vmem:[%s1916_s24 + $0x160] sm:$0xff] %v878_v8  ;;  %v849_v11 = vadd.f32 %v1357_v9, %v1910_v16  ;;  %v881_v12 = vadd.f32 %v1405_v10, %v1910_v16 }
 0x13e   : > { %v585_v13 = vpop.f32.mrf.mxu0  ;;  %v745_v14 = vpop.f32.mrf.mxu1 }
 0x13f   : > { %1044 = vst [vmem:[%s1916_s24 + $0x78] sm:$0xff] %v849_v11  ;;  %1076 = vst [vmem:[%s1916_s24 + $0x178] sm:$0xff] %v881_v12  ;;  %v848_v15 = vadd.f32 %v1910_v16, %v585_v13  ;;  %v880_v17 = vadd.f32 %v1910_v16, %v745_v14 }
 0x140   : > { %v1360_v18 = vpop.f32.mrf.mxu0  ;;  %v1408_v19 = vpop.f32.mrf.mxu1 }
 0x141   : > { %1043 = vst [vmem:[%s1916_s24 + $0x70] sm:$0xff] %v848_v15  ;;  %1075 = vst [vmem:[%s1916_s24 + $0x170] sm:$0xff] %v880_v17  ;;  %v851_v20 = vadd.f32 %v1360_v18, %v1910_v16  ;;  %v883_v21 = vadd.f32 %v1408_v19, %v1910_v16 }
 0x142   : > { %v595_v22 = vpop.f32.mrf.mxu0  ;;  %v755_v23 = vpop.f32.mrf.mxu1 }
 0x143   : > { %1046 = vst [vmem:[%s1916_s24 + $0x88] sm:$0xff] %v851_v20  ;;  %1078 = vst [vmem:[%s1916_s24 + $0x188] sm:$0xff] %v883_v21  ;;  %v850_v24 = vadd.f32 %v1910_v16, %v595_v22  ;;  %v882_v25 = vadd.f32 %v1910_v16, %v755_v23 }
 0x144   : > { %v1363_v26 = vpop.f32.mrf.mxu0  ;;  %v1411_v27 = vpop.f32.mrf.mxu1 }
 0x145   : > { %1045 = vst [vmem:[%s1916_s24 + $0x80] sm:$0xff] %v850_v24  ;;  %1077 = vst [vmem:[%s1916_s24 + $0x180] sm:$0xff] %v882_v25  ;;  %v853_v28 = vadd.f32 %v1363_v26, %v1910_v16  ;;  %v885_v29 = vadd.f32 %v1411_v27, %v1910_v16 }
 0x146   : > { %v605_v30 = vpop.f32.mrf.mxu0  ;;  %v765_v31 = vpop.f32.mrf.mxu1 }
 0x147   : > { %1048 = vst [vmem:[%s1916_s24 + $0x98] sm:$0xff] %v853_v28  ;;  %1080 = vst [vmem:[%s1916_s24 + $0x198] sm:$0xff] %v885_v29  ;;  %v852_v32 = vadd.f32 %v1910_v16, %v605_v30  ;;  %v884_v33 = vadd.f32 %v1910_v16, %v765_v31 }
 0x148   : > { %v1366_v34 = vpop.f32.mrf.mxu0  ;;  %v1414_v35 = vpop.f32.mrf.mxu1 }
 0x149   : > { %1047 = vst [vmem:[%s1916_s24 + $0x90] sm:$0xff] %v852_v32  ;;  %1079 = vst [vmem:[%s1916_s24 + $0x190] sm:$0xff] %v884_v33  ;;  %v855_v36 = vadd.f32 %v1366_v34, %v1910_v16  ;;  %v887_v37 = vadd.f32 %v1414_v35, %v1910_v16 }
 0x14a   : > { %v615_v38 = vpop.f32.mrf.mxu0  ;;  %v775_v39 = vpop.f32.mrf.mxu1 }
 0x14b   : > { %1050 = vst [vmem:[%s1916_s24 + $0xa8] sm:$0xff] %v855_v36  ;;  %1082 = vst [vmem:[%s1916_s24 + $0x1a8] sm:$0xff] %v887_v37  ;;  %v854_v40 = vadd.f32 %v1910_v16, %v615_v38  ;;  %v886_v41 = vadd.f32 %v1910_v16, %v775_v39 }
 0x14c   : > { %v1369_v42 = vpop.f32.mrf.mxu0  ;;  %v1417_v43 = vpop.f32.mrf.mxu1 }
 0x14d   : > { %1049 = vst [vmem:[%s1916_s24 + $0xa0] sm:$0xff] %v854_v40  ;;  %1081 = vst [vmem:[%s1916_s24 + $0x1a0] sm:$0xff] %v886_v41  ;;  %v857_v44 = vadd.f32 %v1369_v42, %v1910_v16  ;;  %v889_v45 = vadd.f32 %v1417_v43, %v1910_v16 }
 0x14e   : > { %v625_v46 = vpop.f32.mrf.mxu0  ;;  %v785_v47 = vpop.f32.mrf.mxu1 }
 0x14f   : > { %1052 = vst [vmem:[%s1916_s24 + $0xb8] sm:$0xff] %v857_v44  ;;  %1084 = vst [vmem:[%s1916_s24 + $0x1b8] sm:$0xff] %v889_v45  ;;  %v856_v48 = vadd.f32 %v1910_v16, %v625_v46  ;;  %v888_v49 = vadd.f32 %v1910_v16, %v785_v47 }
 0x150   : > { %v1372_v50 = vpop.f32.mrf.mxu0  ;;  %v1420_v51 = vpop.f32.mrf.mxu1 }
 0x151   : > { %1051 = vst [vmem:[%s1916_s24 + $0xb0] sm:$0xff] %v856_v48  ;;  %1083 = vst [vmem:[%s1916_s24 + $0x1b0] sm:$0xff] %v888_v49  ;;  %v859_v52 = vadd.f32 %v1372_v50, %v1910_v16  ;;  %v891_v53 = vadd.f32 %v1420_v51, %v1910_v16 }
 0x152   : > { %v635_v54 = vpop.f32.mrf.mxu0  ;;  %v795_v55 = vpop.f32.mrf.mxu1 }
 0x153   : > { %1054 = vst [vmem:[%s1916_s24 + $0xc8] sm:$0xff] %v859_v52  ;;  %1086 = vst [vmem:[%s1916_s24 + $0x1c8] sm:$0xff] %v891_v53  ;;  %v858_v56 = vadd.f32 %v1910_v16, %v635_v54  ;;  %v890_v57 = vadd.f32 %v1910_v16, %v795_v55 }
 0x154   : > { %v1375_v58 = vpop.f32.mrf.mxu0  ;;  %v1423_v59 = vpop.f32.mrf.mxu1 }
 0x155   : > { %1053 = vst [vmem:[%s1916_s24 + $0xc0] sm:$0xff] %v858_v56  ;;  %1085 = vst [vmem:[%s1916_s24 + $0x1c0] sm:$0xff] %v890_v57  ;;  %v861_v60 = vadd.f32 %v1375_v58, %v1910_v16  ;;  %v893_v61 = vadd.f32 %v1423_v59, %v1910_v16 }
 0x156   : > { %v645_v62 = vpop.f32.mrf.mxu0  ;;  %v805_v63 = vpop.f32.mrf.mxu1 }
 0x157   : > { %1056 = vst [vmem:[%s1916_s24 + $0xd8] sm:$0xff] %v861_v60  ;;  %1088 = vst [vmem:[%s1916_s24 + $0x1d8] sm:$0xff] %v893_v61  ;;  %v860_v0 = vadd.f32 %v1910_v16, %v645_v62  ;;  %v892_v1 = vadd.f32 %v1910_v16, %v805_v63 }
 0x158   : > { %v1378_v2 = vpop.f32.mrf.mxu0  ;;  %v1426_v3 = vpop.f32.mrf.mxu1 }
 0x159   : > { %1055 = vst [vmem:[%s1916_s24 + $0xd0] sm:$0xff] %v860_v0  ;;  %1087 = vst [vmem:[%s1916_s24 + $0x1d0] sm:$0xff] %v892_v1  ;;  %v863_v4 = vadd.f32 %v1378_v2, %v1910_v16  ;;  %v895_v5 = vadd.f32 %v1426_v3, %v1910_v16 }
 0x15a   : > { %v655_v6 = vpop.f32.mrf.mxu0  ;;  %v815_v7 = vpop.f32.mrf.mxu1 }
 0x15b   : > { %1058 = vst [vmem:[%s1916_s24 + $0xe8] sm:$0xff] %v863_v4  ;;  %1090 = vst [vmem:[%s1916_s24 + $0x1e8] sm:$0xff] %v895_v5  ;;  %v862_v8 = vadd.f32 %v1910_v16, %v655_v6  ;;  %v894_v9 = vadd.f32 %v1910_v16, %v815_v7 }
 0x15c   : > { %v1381_v10 = vpop.f32.mrf.mxu0  ;;  %v1429_v11 = vpop.f32.mrf.mxu1 }
 0x15d   : > { %1057 = vst [vmem:[%s1916_s24 + $0xe0] sm:$0xff] %v862_v8  ;;  %1089 = vst [vmem:[%s1916_s24 + $0x1e0] sm:$0xff] %v894_v9  ;;  %v865_v12 = vadd.f32 %v1381_v10, %v1910_v16  ;;  %v897_v13 = vadd.f32 %v1429_v11, %v1910_v16 }
 0x15e   : > { %v665_v14 = vpop.f32.mrf.mxu0  ;;  %v825_v15 = vpop.f32.mrf.mxu1 }
 0x15f   : > { %1060 = vst [vmem:[%s1916_s24 + $0xf8] sm:$0xff] %v865_v12  ;;  %1092 = vst [vmem:[%s1916_s24 + $0x1f8] sm:$0xff] %v897_v13  ;;  %v864_v17 = vadd.f32 %v1910_v16, %v665_v14  ;;  %v896_v18 = vadd.f32 %v1910_v16, %v825_v15 }
 0x161   : > { %1059 = vst [vmem:[%s1916_s24 + $0xf0] sm:$0xff] %v864_v17  ;;  %1091 = vst [vmem:[%s1916_s24 + $0x1f0] sm:$0xff] %v896_v18 }
 0x162   : > { %1606 = shalt.err (!%p1603_p5)
}
 0x163   : > { %s1607_s18 = scalar_lea.hbm %s2043_s21, 8192  ;;  %s1611_s27 = scalar_lea.hbm %s2102_s3, 16384 }
 0x164   : > { %p1608_p7 = scmp.ne.s32.totalorder %s2043_s21, %s1607_s18  ;;  %p1612_p9 = scmp.lt.s32.totalorder %s2043_s21, %s2102_s3 }
 0x165   : > { %p1613_p11 = scmp.lt.s32.totalorder %s1611_s27, %s1607_s18 }
 0x166   : > { %p1609_p4 = pnand %p1608_p7, %p1796_p13 }
 0x167   : > { %p1614_p10 = por %p1613_p11, %p1612_p9 }
 0x168   : > { %p1610_p6 = pneg %p1609_p4 }
 0x16a   : > { %p1615_p1 = pnand %p1614_p10, %p1610_p6 }
 0x16c   : > { %1618 = shalt.err (!%p1615_p1)
}
 0x16d   : > { %s1684_s24 = smov 128   ;;  %s1685_s30 = smov 8  }
 0x16e   : > { %1468 = dma.vmem_to_hbm [thread:$0]  (%p1796_p13), %s2045_s29, 8192, %s2043_s21, %s1094_s15, %s1684_s24, %s1684_s24, %s1685_s30  }
 0x16f PF: > { %s1122_s5 = sand.u32 1, %s1657_s12   ;;  %p2118_p8 = scmp.ne.s32.totalorder %s2109_s23, 0 }
 0x170   : > { %p2119_p12 = scmp.ge.s32.totalorder %s1677_s17, 2  ;;  %s1123_s6 = scalar_lea.sflag [#allocation5], %s1122_s5 }
 0x172   : > { %p1479_p0 = pnand %p2119_p12, %p2118_p8 }
 0x174   : > { %p1480_p2 = pneg %p1479_p0 }
 0x176   : > { %1652 = dma.done.wait (%p1480_p2), %s1123_s6, 8192  }
 0x177   : > { %1654 = vsyncadd (%p1480_p2), %s1123_s6, 4294959104  ;;  %s20_s17 = sadd.s32 1, %s1677_s17   ;;  %s2120_s12 = smov %s1661_s13 }
 0x178   : > { %p17_p3 = scmp.ge.s32.totalorder %s20_s17, 4   ;;  %s2121_s13 = smov %s1665_s14 }
 0x179   : > { %s2122_s14 = smov %s1805_s19  ;;  %s2123_s15 = smov %s1673_s16 }
 0x17a   : > { %s2124_s16 = smov %s2126_s28  ;;  %19 = sbr.rel (!%p17_p3) target bundleno = 7 (0x7), region = 90 }
 0x17f   :  { %1128 = vsyncpa [#allocation4], 1 }
 0x180   :  { %1130 = vsyncpa [#allocation4 + $0x1], 1 }
 0x181   :  { %1131 = vsyncpa [#allocation7], 1 }
 0x182   :  { %1132 = vsyncpa [#allocation5], 1 }
 0x183   :  { %1134 = vsyncpa [#allocation5 + $0x1], 1 }

</bundles_post_ra>
